<compile_context>
chip_gen: v7x
topology: tpu7x:2x2x1
jax: 0.10.0
libtpu: 0.0.40
codegen_flags: <defaults>
</compile_context>

<pallas_src>
import jax
import jax.numpy as jnp
from jax import lax
from jax.experimental import pallas as pl
from jax.experimental.pallas import tpu as pltpu


_TARGET_BLOCK_BYTES = 1 << 20   # ~1 MiB per input block (HBM-pipeline sweet spot)
_VMEM_CEILING = 48 << 20        # stay well under v7x's 64 MiB physical VMEM
_VMEM_FLOOR = 16 << 20


def _make_kernel(hw, thw, num_t, beta, eps):
    half_over_beta = 0.5 / beta
    half_beta = 0.5 * beta
    eps2 = eps * eps
    rem = hw - (num_t - 1) * thw          # valid lanes in the last lane-tile
    ragged = rem != thw

    def pack4(a, b, c_, d):
        lane = lax.broadcasted_iota(jnp.int32, (1, 1, 1, 4), 3)
        return (jnp.where(lane == 0, a, 0.0)
                + jnp.where(lane == 1, b, 0.0)
                + jnp.where(lane == 2, c_, 0.0)
                + jnp.where(lane == 3, d, 0.0))

    def kernel(x_ref, y_ref, losses_ref, cos_ref):
        # x_ref, y_ref : (TN, C, THW) blocks, native dtype
        # losses_ref   : (1, 1, 1, 4) f32 per-tile partial sums
        #                [smooth_l1, l1, mse, bce_with_logits]
        # cos_ref      : (TN, 1, THW) f32 cosine-similarity block
        x = x_ref[...].astype(jnp.float32)
        y = y_ref[...].astype(jnp.float32)

        diff = x - y
        absd = jnp.abs(diff)
        sq = diff * diff
        xy = x * y

        # Channel (sublane) reductions for the cosine map.
        dot = jnp.sum(xy, axis=1, keepdims=True)        # (TN, 1, THW)
        nx2 = jnp.sum(x * x, axis=1, keepdims=True)
        ny2 = jnp.sum(y * y, axis=1, keepdims=True)

        # torch.nn.CosineSimilarity clamps each norm separately:
        #   dot / (max(||x||, eps) * max(||y||, eps));  rsqrt -> EUP slot (nearly free).
        cos_ref[...] = (dot
                        * lax.rsqrt(jnp.maximum(nx2, eps2))
                        * lax.rsqrt(jnp.maximum(ny2, eps2)))

        # BCEWithLogits (pre-mean): max(x, 0) - x*y + log1p(exp(-|x|))
        bce = jnp.maximum(x, 0.0) - xy + jnp.log1p(jnp.exp(-absd))
        # SmoothL1(beta), constants folded.
        sl1 = jnp.where(absd < beta, sq * half_over_beta, absd - half_beta)

        losses_ref[...] = pack4(jnp.sum(sl1), jnp.sum(absd), jnp.sum(sq), jnp.sum(bce))

        if ragged:
            # Only the ragged last lane-tile pays for masking: columns read past the
            # end of HW hold garbage and must not pollute the loss sums.
            @pl.when(pl.program_id(1) == num_t - 1)
            def _():
                col = lax.broadcasted_iota(jnp.int32, sl1.shape, 2)
                valid = col < rem
                zero = jnp.zeros_like(sl1)
                losses_ref[...] = pack4(
                    jnp.sum(jnp.where(valid, sl1, zero)),
                    jnp.sum(jnp.where(valid, absd, zero)),
                    jnp.sum(jnp.where(valid, sq, zero)),
                    jnp.sum(jnp.where(valid, bce, zero)),
                )

    return kernel


def loss_tracer(x_nchw, y_nchw, *, beta=0.5, eps=1e-6,
                target_block_bytes=_TARGET_BLOCK_BYTES):
    """x_nchw, y_nchw: (N, C, H, W) float arrays.

    Returns (losses[4] f32 = [smooth_l1, l1, mse, bce_with_logits] (mean reduction),
             cosine_similarity map (N, H, W) f32 over the channel axis).
    """
    assert x_nchw.shape == y_nchw.shape
    n, c, h, w = x_nchw.shape
    hw = h * w
    itemsize = jnp.dtype(x_nchw.dtype).itemsize

    # ---- Lane (HW) tile: a 128-multiple sized toward ~target_block_bytes -------------
    lane_budget = max(128, (target_block_bytes // (c * itemsize)) // 128 * 128)
    if hw >= 128:
        thw = int(min(lane_budget, (hw // 128) * 128))
    else:
        thw = hw                                   # block == full dim (allowed)
    num_t = -(-hw // thw)                          # ragged last tile masked in-kernel

    # ---- Batch fold: grow the block along N (divisor of n => no batch raggedness) ----
    row_bytes = c * thw * itemsize
    desired_tn = max(1, min(n, target_block_bytes // max(row_bytes, 1)))
    tn = 1
    for d in range(int(desired_tn), 0, -1):
        if n % d == 0:
            tn = d
            break
    num_nb = n // tn

    # ---- VMEM budget computed from block sizes (not "all of it"); <=48 MiB for v7x ---
    in_block = tn * c * thw * itemsize
    cos_block = tn * thw * 4
    temps = 8 * tn * c * thw * 4                   # f32 elementwise temporaries
    vmem_est = 2 * 2 * in_block + 2 * cos_block + temps + (2 << 20)
    vmem_limit = int(min(_VMEM_CEILING, max(_VMEM_FLOOR, vmem_est)))

    # No jnp.pad: reshape only (no extra HBM copies of the full tensors).
    x = x_nchw.reshape(n, c, hw)
    y = y_nchw.reshape(n, c, hw)

    kernel = _make_kernel(hw, thw, num_t, float(beta), float(eps))

    partial_sums, cos_flat = pl.pallas_call(
        kernel,
        out_shape=(
            jax.ShapeDtypeStruct((num_nb, num_t, 1, 4), jnp.float32),  # per-tile partials
            jax.ShapeDtypeStruct((n, 1, hw), jnp.float32),             # cosine map
        ),
        grid_spec=pltpu.PrefetchScalarGridSpec(
            num_scalar_prefetch=0,
            grid=(num_nb, num_t),
            in_specs=[
                pl.BlockSpec((tn, c, thw), lambda i, t: (i, 0, t)),
                pl.BlockSpec((tn, c, thw), lambda i, t: (i, 0, t)),
            ],
            out_specs=(
                pl.BlockSpec((1, 1, 1, 4), lambda i, t: (i, t, 0, 0)),
                pl.BlockSpec((tn, 1, thw), lambda i, t: (i, 0, t)),
            ),
        ),
        compiler_params=pltpu.CompilerParams(
            # Every (i, t) writes disjoint output blocks -> both axes parallel
            # (lets v7x's two TensorCores split HW even when N is tiny).
            dimension_semantics=("parallel", "parallel"),
            vmem_limit_bytes=vmem_limit,
        ),
    )(x, y)

    count = float(n * c * hw)
    losses = partial_sums.sum(axis=(0, 1, 2)) / count
    cos = cos_flat.reshape(n, h, w)
    return losses, cos


def _reference(x_nchw, y_nchw, *, beta=0.5, eps=1e-6):
    """Pure-JAX reference (mirrors the torch losses) for validation."""
    x = x_nchw.astype(jnp.float32)
    y = y_nchw.astype(jnp.float32)
    diff = x - y
    absd = jnp.abs(diff)
    sl1 = jnp.mean(jnp.where(absd < beta, 0.5 * diff * diff / beta, absd - 0.5 * beta))
    l1 = jnp.mean(absd)
    mse = jnp.mean(diff * diff)
    bce = jnp.mean(jnp.maximum(x, 0.0) - x * y + jnp.log1p(jnp.exp(-absd)))
    dot = jnp.sum(x * y, axis=1)
    nx = jnp.sqrt(jnp.sum(x * x, axis=1))
    ny = jnp.sqrt(jnp.sum(y * y, axis=1))
    cos = dot / (jnp.maximum(nx, eps) * jnp.maximum(ny, eps))
    return jnp.stack([sl1, l1, mse, bce]), cos


if __name__ == "__main__":
    key = jax.random.PRNGKey(0)
    kx, ky = jax.random.split(key)
    N, C, H, W = 2, 4, 16, 16
    # x plays the role of predictions/logits; y the role of targets in [0, 1]
    # (valid for BCEWithLogits; arbitrary for the regression/cosine losses).
    x = jax.random.normal(kx, (N, C, H, W), dtype=jnp.float32)
    y = jax.random.uniform(ky, (N, C, H, W), dtype=jnp.float32)

    losses, cos_map = loss_tracer(x, y)
    losses = jax.block_until_ready(losses)
    cos_map = jax.block_until_ready(cos_map)

    ref_losses, ref_cos = _reference(x, y)
    assert jnp.allclose(losses, ref_losses, rtol=1e-4, atol=1e-5), (losses, ref_losses)
    assert jnp.allclose(cos_map, ref_cos, rtol=1e-4, atol=1e-5)

    print("KERNEL_OK")
</pallas_src>

<mosaic_0001>
module attributes {stable_mosaic.version = 11 : i64} {
  func.func @kernel(%arg0: i32, %arg1: i32, %arg2: memref<2x4x256xf32, #tpu.memory_space<vmem>>, %arg3: memref<2x4x256xf32, #tpu.memory_space<vmem>>, %arg4: memref<1x1x1x4xf32, #tpu.memory_space<vmem>>, %arg5: memref<2x1x256xf32, #tpu.memory_space<vmem>>) attributes {dimension_semantics = [#tpu.dimension_semantics<parallel>, #tpu.dimension_semantics<parallel>], iteration_bounds = array<i64: 1, 1>, scalar_prefetch = 0 : i64, scratch_operands = 0 : i64, tpu.core_type = #tpu.core_type<tc>, window_params = [{transform_indices = @transform_0, window_bounds = array<i64: 2, 4, 256>}, {transform_indices = @transform_1, window_bounds = array<i64: 2, 4, 256>}, {transform_indices = @transform_2, window_bounds = array<i64: 1, 1, 1, 4>}, {transform_indices = @transform_3, window_bounds = array<i64: 2, 1, 256>}]} {
    %c0 = arith.constant 0 : index
    %c0_0 = arith.constant 0 : index
    %c0_1 = arith.constant 0 : index
    %0 = vector.load %arg2[%c0, %c0_0, %c0_1] : memref<2x4x256xf32, #tpu.memory_space<vmem>>, vector<2x4x256xf32>
    %c0_2 = arith.constant 0 : index
    %c0_3 = arith.constant 0 : index
    %c0_4 = arith.constant 0 : index
    %1 = vector.load %arg3[%c0_2, %c0_3, %c0_4] : memref<2x4x256xf32, #tpu.memory_space<vmem>>, vector<2x4x256xf32>
    %2 = arith.subf %0, %1 : vector<2x4x256xf32>
    %3 = math.absf %2 : vector<2x4x256xf32>
    %4 = arith.mulf %2, %2 : vector<2x4x256xf32>
    %5 = arith.mulf %0, %1 : vector<2x4x256xf32>
    %cst = arith.constant dense<0.000000e+00> : vector<2x256xf32>
    %6 = vector.multi_reduction <add>, %5, %cst [1] : vector<2x4x256xf32> to vector<2x256xf32>
    %7 = vector.shape_cast %6 : vector<2x256xf32> to vector<2x1x256xf32>
    %8 = arith.mulf %0, %0 : vector<2x4x256xf32>
    %cst_5 = arith.constant dense<0.000000e+00> : vector<2x256xf32>
    %9 = vector.multi_reduction <add>, %8, %cst_5 [1] : vector<2x4x256xf32> to vector<2x256xf32>
    %10 = vector.shape_cast %9 : vector<2x256xf32> to vector<2x1x256xf32>
    %11 = arith.mulf %1, %1 : vector<2x4x256xf32>
    %cst_6 = arith.constant dense<0.000000e+00> : vector<2x256xf32>
    %12 = vector.multi_reduction <add>, %11, %cst_6 [1] : vector<2x4x256xf32> to vector<2x256xf32>
    %13 = vector.shape_cast %12 : vector<2x256xf32> to vector<2x1x256xf32>
    %cst_7 = arith.constant 9.99999996E-13 : f32
    %14 = vector.broadcast %cst_7 : f32 to vector<2x1x256xf32>
    %15 = arith.maximumf %10, %14 : vector<2x1x256xf32>
    %16 = math.rsqrt %15 : vector<2x1x256xf32>
    %17 = arith.mulf %7, %16 : vector<2x1x256xf32>
    %cst_8 = arith.constant 9.99999996E-13 : f32
    %18 = vector.broadcast %cst_8 : f32 to vector<2x1x256xf32>
    %19 = arith.maximumf %13, %18 : vector<2x1x256xf32>
    %20 = math.rsqrt %19 : vector<2x1x256xf32>
    %21 = arith.mulf %17, %20 : vector<2x1x256xf32>
    %c0_9 = arith.constant 0 : index
    %c0_10 = arith.constant 0 : index
    %c0_11 = arith.constant 0 : index
    %22 = vector.load %arg5[%c0_9, %c0_10, %c0_11] : memref<2x1x256xf32, #tpu.memory_space<vmem>>, vector<2x1x256xf32>
    tpu.vector_store %arg5[%c0_9, %c0_10, %c0_11], %21 {strides = array<i32>} : memref<2x1x256xf32, #tpu.memory_space<vmem>>, vector<2x1x256xf32>,
    %cst_12 = arith.constant 0.000000e+00 : f32
    %23 = vector.broadcast %cst_12 : f32 to vector<2x4x256xf32>
    %24 = arith.maximumf %0, %23 : vector<2x4x256xf32>
    %25 = arith.subf %24, %5 : vector<2x4x256xf32>
    %cst_13 = arith.constant 0.000000e+00 : f32
    %26 = vector.broadcast %cst_13 : f32 to vector<2x4x256xf32>
    %27 = arith.subf %26, %3 : vector<2x4x256xf32>
    %28 = math.exp %27 : vector<2x4x256xf32>
    %29 = math.log1p %28 : vector<2x4x256xf32>
    %30 = arith.addf %25, %29 : vector<2x4x256xf32>
    %cst_14 = arith.constant 5.000000e-01 : f32
    %31 = vector.broadcast %cst_14 : f32 to vector<2x4x256xf32>
    %32 = arith.cmpf olt, %3, %31 : vector<2x4x256xf32>
    %cst_15 = arith.constant 1.000000e+00 : f32
    %33 = vector.broadcast %cst_15 : f32 to vector<2x4x256xf32>
    %34 = arith.mulf %4, %33 : vector<2x4x256xf32>
    %cst_16 = arith.constant 2.500000e-01 : f32
    %35 = vector.broadcast %cst_16 : f32 to vector<2x4x256xf32>
    %36 = arith.subf %3, %35 : vector<2x4x256xf32>
    %37 = arith.select %32, %34, %36 : vector<2x4x256xi1>, vector<2x4x256xf32>
    %38 = vector.shape_cast %37 : vector<2x4x256xf32> to vector<1x2x4x256xf32>
    %cst_17 = arith.constant dense<0.000000e+00> : vector<1xf32>
    %39 = vector.multi_reduction <add>, %38, %cst_17 [1, 2, 3] : vector<1x2x4x256xf32> to vector<1xf32>
    %40 = vector.shape_cast %39 : vector<1xf32> to vector<1x1x1x1xf32>
    %41 = vector.extract %40[0, 0, 0, 0] : f32 from vector<1x1x1x1xf32>
    %42 = vector.shape_cast %3 : vector<2x4x256xf32> to vector<1x2x4x256xf32>
    %cst_18 = arith.constant dense<0.000000e+00> : vector<1xf32>
    %43 = vector.multi_reduction <add>, %42, %cst_18 [1, 2, 3] : vector<1x2x4x256xf32> to vector<1xf32>
    %44 = vector.shape_cast %43 : vector<1xf32> to vector<1x1x1x1xf32>
    %45 = vector.extract %44[0, 0, 0, 0] : f32 from vector<1x1x1x1xf32>
    %46 = vector.shape_cast %4 : vector<2x4x256xf32> to vector<1x2x4x256xf32>
    %cst_19 = arith.constant dense<0.000000e+00> : vector<1xf32>
    %47 = vector.multi_reduction <add>, %46, %cst_19 [1, 2, 3] : vector<1x2x4x256xf32> to vector<1xf32>
    %48 = vector.shape_cast %47 : vector<1xf32> to vector<1x1x1x1xf32>
    %49 = vector.extract %48[0, 0, 0, 0] : f32 from vector<1x1x1x1xf32>
    %50 = vector.shape_cast %30 : vector<2x4x256xf32> to vector<1x2x4x256xf32>
    %cst_20 = arith.constant dense<0.000000e+00> : vector<1xf32>
    %51 = vector.multi_reduction <add>, %50, %cst_20 [1, 2, 3] : vector<1x2x4x256xf32> to vector<1xf32>
    %52 = vector.shape_cast %51 : vector<1xf32> to vector<1x1x1x1xf32>
    %53 = vector.extract %52[0, 0, 0, 0] : f32 from vector<1x1x1x1xf32>
    %54 = tpu.iota {dimensions = array<i32: 3>} : vector<1x1x1x4xi32>
    %c0_i32 = arith.constant 0 : i32
    %55 = vector.broadcast %c0_i32 : i32 to vector<1x1x1x4xi32>
    %56 = arith.cmpi eq, %54, %55 : vector<1x1x1x4xi32>
    %cst_21 = arith.constant 0.000000e+00 : f32
    %57 = vector.broadcast %41 : f32 to vector<1x1x1x4xf32>
    %58 = vector.broadcast %cst_21 : f32 to vector<1x1x1x4xf32>
    %59 = arith.select %56, %57, %58 : vector<1x1x1x4xi1>, vector<1x1x1x4xf32>
    %c1_i32 = arith.constant 1 : i32
    %60 = vector.broadcast %c1_i32 : i32 to vector<1x1x1x4xi32>
    %61 = arith.cmpi eq, %54, %60 : vector<1x1x1x4xi32>
    %cst_22 = arith.constant 0.000000e+00 : f32
    %62 = vector.broadcast %45 : f32 to vector<1x1x1x4xf32>
    %63 = vector.broadcast %cst_22 : f32 to vector<1x1x1x4xf32>
    %64 = arith.select %61, %62, %63 : vector<1x1x1x4xi1>, vector<1x1x1x4xf32>
    %65 = arith.addf %59, %64 : vector<1x1x1x4xf32>
    %c2_i32 = arith.constant 2 : i32
    %66 = vector.broadcast %c2_i32 : i32 to vector<1x1x1x4xi32>
    %67 = arith.cmpi eq, %54, %66 : vector<1x1x1x4xi32>
    %cst_23 = arith.constant 0.000000e+00 : f32
    %68 = vector.broadcast %49 : f32 to vector<1x1x1x4xf32>
    %69 = vector.broadcast %cst_23 : f32 to vector<1x1x1x4xf32>
    %70 = arith.select %67, %68, %69 : vector<1x1x1x4xi1>, vector<1x1x1x4xf32>
    %71 = arith.addf %65, %70 : vector<1x1x1x4xf32>
    %c3_i32 = arith.constant 3 : i32
    %72 = vector.broadcast %c3_i32 : i32 to vector<1x1x1x4xi32>
    %73 = arith.cmpi eq, %54, %72 : vector<1x1x1x4xi32>
    %cst_24 = arith.constant 0.000000e+00 : f32
    %74 = vector.broadcast %53 : f32 to vector<1x1x1x4xf32>
    %75 = vector.broadcast %cst_24 : f32 to vector<1x1x1x4xf32>
    %76 = arith.select %73, %74, %75 : vector<1x1x1x4xi1>, vector<1x1x1x4xf32>
    %77 = arith.addf %71, %76 : vector<1x1x1x4xf32>
    %c0_25 = arith.constant 0 : index
    %c0_26 = arith.constant 0 : index
    %c0_27 = arith.constant 0 : index
    %c0_28 = arith.constant 0 : index
    %78 = vector.load %arg4[%c0_25, %c0_26, %c0_27, %c0_28] : memref<1x1x1x4xf32, #tpu.memory_space<vmem>>, vector<1x1x1x4xf32>
    tpu.vector_store %arg4[%c0_25, %c0_26, %c0_27, %c0_28], %77 {strides = array<i32>} : memref<1x1x1x4xf32, #tpu.memory_space<vmem>>, vector<1x1x1x4xf32>,
    return
  }
  func.func @transform_0(%arg0: i32, %arg1: i32) -> (i32, i32, i32) {
    %c0_i32 = arith.constant 0 : i32
    %c0_i32_0 = arith.constant 0 : i32
    return %arg0, %c0_i32, %arg1 : i32, i32, i32
  }
  func.func @transform_1(%arg0: i32, %arg1: i32) -> (i32, i32, i32) {
    %c0_i32 = arith.constant 0 : i32
    %c0_i32_0 = arith.constant 0 : i32
    return %arg0, %c0_i32, %arg1 : i32, i32, i32
  }
  func.func @transform_2(%arg0: i32, %arg1: i32) -> (i32, i32, i32, i32) {
    %c0_i32 = arith.constant 0 : i32
    %c0_i32_0 = arith.constant 0 : i32
    %c0_i32_1 = arith.constant 0 : i32
    return %arg0, %arg1, %c0_i32, %c0_i32_0 : i32, i32, i32, i32
  }
  func.func @transform_3(%arg0: i32, %arg1: i32) -> (i32, i32, i32) {
    %c0_i32 = arith.constant 0 : i32
    %c0_i32_0 = arith.constant 0 : i32
    return %arg0, %c0_i32, %arg1 : i32, i32, i32
  }
}

</mosaic_0001>

<bundles_post_ra>
// kernel: tpu_custom_call.1
= control target key start
LH: loop header
LB: loop body
LE: loop exit
PB: predicated region body
PF: predicated region fallthrough
CT: control target
= control target key end

     0   :  { %9 = vsyncpa [#allocation3], 0  ;;  %s712_s0 = inlined_call_operand.hbm [shape: f32[2,4,256], index: 0, kind: input, shape index: {}]   ;;  %s713_s1 = inlined_call_operand.hbm [shape: f32[2,4,256], index: 1, kind: input, shape index: {}]   ;;  %s714_s2 = inlined_call_operand.hbm [shape: f32[1,1,1,4], index: 2, kind: output, shape index: {0}]   ;;  %s715_s3 = inlined_call_operand.hbm [shape: f32[2,1,256], index: 3, kind: output, shape index: {1}]  }
   0x1   :  { %10 = vsyncpa [#allocation6], 0 }
   0x2   :  { %11 = vsyncpa [#allocation4], 0 }
   0x3   :  { %12 = vsyncpa [#allocation9], 0  ;;  %s542_s12 = smov [#allocation2]   ;;  %s446_s16 = scalar_lea.hbm %s712_s0, 256 }
   0x4   :  { %s18_s13 = sshll.u32 %s542_s12, 4  ;;  %p447_p0 = scmp.ne.s32.totalorder %s712_s0, %s446_s16  ;;  %s19_s13 = int_to_ptr.vmem [resolvable:$true] %s18_s13 }
   0x5   :  { %p450_p1 = scmp.lt.u32.totalorder %s446_s16, %s712_s0 }
   0x7   :  { %p452_p2 = pnand %p450_p1, %p447_p0 }
   0x9   :  { %455 = shalt.err (!%p452_p2)
}
   0xa   :  { %s456_s21 = scalar_lea.vmem %s19_s13, 256  ;;  %p461_p4 = scmp.lt.s32.totalorder %s19_s13, %s19_s13 }
   0xb   :  { %p457_p3 = scmp.ne.s32.totalorder %s19_s13, %s456_s21  ;;  %p462_p5 = scmp.lt.s32.totalorder %s456_s21, %s456_s21 }
   0xd   :  { %p463_p6 = por %p462_p5, %p461_p4 }
   0xf   :  { %p464_p7 = pnand %p463_p6, %p457_p3 }
  0x11   :  { %467 = shalt.err (!%p464_p7)
}
  0x12   :  { %s543_s22 = smov 128   ;;  %s544_s23 = smov 8  }
  0x13   :  { %24 = dma.hbm_to_vmem [thread:$0]  %s712_s0, 256, %s19_s13, [#allocation3], %s543_s22, %s543_s22, %s544_s23  }
  0x14   :  { %s545_s26 = smov [#allocation5]   ;;  %s468_s30 = scalar_lea.hbm %s713_s1, 256 }
  0x15   :  { %s30_s27 = sshll.u32 %s545_s26, 4  ;;  %p469_p8 = scmp.ne.s32.totalorder %s713_s1, %s468_s30  ;;  %s31_s27 = int_to_ptr.vmem [resolvable:$true] %s30_s27 }
  0x16   :  { %p472_p9 = scmp.lt.u32.totalorder %s468_s30, %s713_s1 }
  0x18   :  { %p474_p10 = pnand %p472_p9, %p469_p8 }
  0x1a   :  { %477 = shalt.err (!%p474_p10)
}
  0x1b   :  { %s478_s8 = scalar_lea.vmem %s31_s27, 256  ;;  %p483_p12 = scmp.lt.s32.totalorder %s31_s27, %s31_s27 }
  0x1c   :  { %p479_p11 = scmp.ne.s32.totalorder %s31_s27, %s478_s8  ;;  %p484_p13 = scmp.lt.s32.totalorder %s478_s8, %s478_s8 }
  0x1e   :  { %p485_p0 = por %p484_p13, %p483_p12 }
  0x20   :  { %p486_p1 = pnand %p485_p0, %p479_p11 }
  0x22   :  { %489 = shalt.err (!%p486_p1)
}
  0x23   :  { %36 = dma.hbm_to_vmem [thread:$0]  %s713_s1, 256, %s31_s27, [#allocation6], %s543_s22, %s543_s22, %s544_s23  }
  0x24   :  { %534 = dma.done.wait [#allocation3], 256  }
  0x25   :  { %535 = vsyncadd [#allocation3], 4294967040 }
  0x26   :  { %536 = dma.done.wait [#allocation6], 256  }
  0x27   :  { %537 = vsyncadd [#allocation6], 4294967040  ;;  %v595_v0 = vld [vmem:[#allocation2] sm:$0xff]  ;;  %v597_v1 = vld [vmem:[#allocation2 + $0x8] sm:$0xff]  ;;  %vm61_vm0 = vcmask 1043456   ;;  %s547_s1 = smov [#allocation8]  }
  0x28   :  { %v45_v2 = vld [vmem:[#allocation5] sm:$0xff]  ;;  %v46_v3 = vld [vmem:[#allocation5 + $0x8] sm:$0xff]  ;;  %v90_v4 = vmul.f32 %v595_v0, %v595_v0  ;;  %v91_v5 = vmul.f32 %v597_v1, %v597_v1  ;;  %s386_s10 = sshll.u32 %s547_s1, 4  ;;  %s387_s10 = int_to_ptr.vmem [resolvable:$true] %s386_s10 }
  0x29   :  { %v126_v6 = vmul.f32 %v45_v2, %v45_v2  ;;  %v127_v7 = vmul.f32 %v46_v3, %v46_v3  ;;  %v48_v20 = vsub.f32 %v597_v1, %v46_v3  ;;  %v47_v21 = vsub.f32 %v595_v0, %v45_v2  ;;  %s490_s11 = scalar_lea.vmem %s387_s10, 64  ;;  %p495_p3 = scmp.lt.s32.totalorder %s387_s10, %s387_s10 }
  0x2a   :  { %v94_v8 = vcombine.high %v90_v4, %v90_v4  ;;  %v95_v9 = vcombine.high %v91_v5, %v91_v5  ;;  %v604_v10 = vsel %vm61_vm0, %v90_v4, 0.0  ;;  %v607_v11 = vsel %vm61_vm0, %v91_v5, 0.0  ;;  %p491_p2 = scmp.ne.s32.totalorder %s387_s10, %s490_s11  ;;  %p496_p4 = scmp.lt.s32.totalorder %s490_s11, %s490_s11 }
  0x2b   :  { %v130_v14 = vcombine.high %v126_v6, %v126_v6  ;;  %v131_v15 = vcombine.high %v127_v7, %v127_v7  ;;  %v616_v16 = vsel %vm61_vm0, %v126_v6, 0.0  ;;  %v619_v17 = vsel %vm61_vm0, %v127_v7, 0.0 }
  0x2c   :  { %v610_v12 = vsel %vm61_vm0, %v94_v8, 0.0  ;;  %v613_v13 = vsel %vm61_vm0, %v95_v9, 0.0  ;;  %v50_v22 = vand.u32 2147483647, %v48_v20  ;;  %v49_v23 = vand.u32 2147483647, %v47_v21  ;;  %p497_p5 = por %p496_p4, %p495_p3 }
  0x2d   :  { %v622_v18 = vsel %vm61_vm0, %v130_v14, 0.0  ;;  %v625_v19 = vsel %vm61_vm0, %v131_v15, 0.0  ;;  %v51_v25 = vmul.f32 %v47_v21, %v47_v21  ;;  %v52_v26 = vmul.f32 %v48_v20, %v48_v20 }
  0x2e   :  { %v233_v24 = vsub.f32 0.0, %v50_v22  ;;  %vm258_vm1 = vcmp.lt.f32.partialorder %v49_v23, 0.5  ;;  %vm259_vm2 = vcmp.lt.f32.partialorder %v50_v22, 0.5  ;;  %v403_v27 = vadd.f32 -0.25, %v49_v23  ;;  %p498_p6 = pnand %p497_p5, %p491_p2 }
  0x2f   :  { %v404_v29 = vadd.f32 -0.25, %v50_v22  ;;  %v232_v30 = vsub.f32 0.0, %v49_v23  ;;  %v288_v31 = vcombine.high %v49_v23, %v49_v23  ;;  %v53_v36 = vmul.f32 %v45_v2, %v595_v0 }
  0x30   :  { %v236_v28 = vmul.f32 1.442695, %v233_v24  ;;  %v262_v32 = vsel %vm258_vm1, %v51_v25, %v403_v27  ;;  %v289_v40 = vcombine.high %v50_v22, %v50_v22  ;;  %v292_v42 = vsel %vm61_vm0, %v49_v23, 0.0 }
  0x31   :  { %v263_v33 = vsel %vm259_vm2, %v52_v26, %v404_v29  ;;  %v266_v34 = vcombine.high %v262_v32, %v262_v32  ;;  %v270_v35 = vsel %vm61_vm0, %v262_v32, 0.0  ;;  %v234_v39 = vmul.f32 1.442695, %v232_v30 }
  0x32   :  { %v267_v37 = vcombine.high %v263_v33, %v263_v33  ;;  %v273_v38 = vsel %vm61_vm0, %v263_v33, 0.0  ;;  %422 = vpow2.f32 %v236_v28  ;;  %v293_v43 = vsel %vm61_vm0, %v288_v31, 0.0 }
  0x33   :  { %v271_v41 = vsel %vm61_vm0, %v266_v34, 0.0  ;;  %424 = vpow2.f32 %v234_v39  ;;  %v294_v45 = vadd.f32 %v293_v43, %v292_v42  ;;  %v54_v46 = vmul.f32 %v46_v3, %v597_v1 }
  0x34   :  { %v272_v44 = vadd.f32 %v271_v41, %v270_v35  ;;  %v275_v47 = vsel %vm61_vm0, %v267_v37, 0.0  ;;  %v295_v48 = vsel %vm61_vm0, %v50_v22, 0.0  ;;  %v310_v49 = vcombine.high %v51_v25, %v51_v25 }
  0x35   :  { %v311_v50 = vcombine.high %v52_v26, %v52_v26  ;;  %v296_v52 = vadd.f32 %v295_v48, %v294_v45  ;;  %v297_v53 = vsel %vm61_vm0, %v289_v40, 0.0  ;;  %v314_v54 = vsel %vm61_vm0, %v51_v25, 0.0 }
  0x36   :  { %v274_v51 = vadd.f32 %v273_v38, %v272_v44  ;;  %v315_v55 = vsel %vm61_vm0, %v310_v49, 0.0  ;;  %v317_v56 = vsel %vm61_vm0, %v52_v26, 0.0  ;;  %v57_v57 = vcombine.high %v53_v36, %v53_v36 }
  0x37   :  { %v58_v58 = vcombine.high %v54_v46, %v54_v46  ;;  %v316_v60 = vadd.f32 %v315_v55, %v314_v54  ;;  %v643_v61 = vsel %vm61_vm0, %v53_v36, 0.0  ;;  %v319_v62 = vsel %vm61_vm0, %v311_v50, 0.0 }
  0x38   :  { %v276_v59 = vadd.f32 %v275_v47, %v274_v51  ;;  %v647_v63 = vsel %vm61_vm0, %v57_v57, 0.0  ;;  %v650_v2 = vsel %vm61_vm0, %v54_v46, 0.0  ;;  %v298_v4 = vadd.f32 %v297_v53, %v296_v52 }
  0x39   :  { %v653_v3 = vsel %vm61_vm0, %v58_v58, 0.0  ;;  %v318_v5 = vadd.f32 %v317_v56, %v316_v60  ;;  %v229_v22 = vmax.f32 %v597_v1, 0.0  ;;  %v228_v25 = vmax.f32 %v595_v0, 0.0 }
  0x3a   :  { %277 = vadd.xlane.f32.xlu0 %v276_v59  ;;  %v106_v47 = vrot.slane %v610_v12, 4  ;;  %v113_v48 = vrot.slane %v607_v11, 4  ;;  %v120_v49 = vrot.slane %v613_v13, 4  ;;  %v135_v51 = vrot.slane %v616_v16, 4 }
  0x3b   :  { %v320_v6 = vadd.f32 %v319_v62, %v318_v5  ;;  %v231_v29 = vsub.f32 %v229_v22, %v54_v46  ;;  %v230_v32 = vsub.f32 %v228_v25, %v53_v36  ;;  %v99_v46 = vrot.slane %v604_v10, 4 }
  0x3c   :  { %v423_v7 = vpop.eup %422  ;;  %v107_v52 = vadd.f32 %v106_v47, %v610_v12  ;;  %v142_v53 = vrot.slane %v622_v18, 4  ;;  %v114_v54 = vadd.f32 %v113_v48, %v607_v11  ;;  %v149_v55 = vrot.slane %v619_v17, 4 }
  0x3d   :  { %v425_v8 = vpop.eup %424  ;;  %321 = vadd.xlane.f32.xlu1 %v320_v6  ;;  %v247_v9 = vadd.f32 1.0, %v423_v7  ;;  %v250_v20 = vmul.f32 -0.5, %v423_v7  ;;  %v253_v24 = vand.u32 2147483647, %v423_v7  ;;  %v100_v50 = vadd.f32 %v99_v46, %v604_v10 }
  0x3e   :  { %299 = vadd.xlane.f32.xlu0 %v298_v4  ;;  %v238_v14 = vadd.f32 1.0, %v425_v8  ;;  %v241_v15 = vmul.f32 -0.5, %v425_v8  ;;  %v244_v26 = vand.u32 2147483647, %v425_v8  ;;  %v121_v56 = vadd.f32 %v120_v49, %v613_v13 }
  0x3f   :  { %426 = vlog2.f32 %v247_v9  ;;  %v251_v21 = vadd.f32 1.0, %v250_v20  ;;  %vm254_vm3 = vcmp.lt.f32.partialorder %v253_v24, 0.0004427343  ;;  %v156_v57 = vrot.slane %v625_v19, 4 }
  0x40   :  { %428 = vlog2.f32 %v238_v14  ;;  %v242_v23 = vadd.f32 1.0, %v241_v15  ;;  %vm245_vm4 = vcmp.lt.f32.partialorder %v244_v26, 0.0004427343  ;;  %v101_v58 = vrot.slane %v100_v50, 2 }
  0x41   :  { %v252_v27 = vmul.f32 %v423_v7, %v251_v21  ;;  %v136_v59 = vadd.f32 %v135_v51, %v616_v16  ;;  %v108_v60 = vrot.slane %v107_v52, 2  ;;  %v143_v10 = vadd.f32 %v142_v53, %v622_v18 }
  0x42   :  { %v243_v30 = vmul.f32 %v425_v8, %v242_v23  ;;  %v115_v62 = vrot.slane %v114_v54, 2  ;;  %v150_v4 = vadd.f32 %v149_v55, %v619_v17  ;;  %v122_v12 = vrot.slane %v121_v56, 2 }
  0x43   :  { %v157_v5 = vadd.f32 %v156_v57, %v625_v19  ;;  %v102_v6 = vadd.f32 %v101_v58, %v100_v50  ;;  %v137_v11 = vrot.slane %v136_v59, 2  ;;  %v109_v7 = vadd.f32 %v108_v60, %v107_v52 }
  0x44   :  { %v144_v8 = vrot.slane %v143_v10, 2  ;;  %v116_v9 = vadd.f32 %v115_v62, %v114_v54  ;;  %v151_v13 = vrot.slane %v150_v4, 2  ;;  %v123_v14 = vadd.f32 %v122_v12, %v121_v56 }
  0x45   :  { %v158_v15 = vrot.slane %v157_v5, 2  ;;  %v103_v20 = vrot.slane %v102_v6, 1  ;;  %v138_v21 = vadd.f32 %v137_v11, %v136_v59  ;;  %v110_v16 = vrot.slane %v109_v7, 1 }
  0x46   :  { %v145_v22 = vadd.f32 %v144_v8, %v143_v10  ;;  %v117_v23 = vrot.slane %v116_v9, 1  ;;  %v152_v18 = vadd.f32 %v151_v13, %v150_v4  ;;  %v124_v24 = vrot.slane %v123_v14, 1 }
  0x47   :  { %v159_v25 = vadd.f32 %v158_v15, %v157_v5  ;;  %v104_v17 = vadd.f32 %v103_v20, %v102_v6  ;;  %v139_v26 = vrot.slane %v138_v21, 1 }
  0x48   :  { %v146_v19 = vrot.slane %v145_v22, 1 }
  0x49   :  { %v427_v28 = vpop.eup %426 }
  0x4a   :  { %v429_v31 = vpop.eup %428  ;;  %v249_v33 = vmul.f32 0.6931472, %v427_v28  ;;  %v118_v28 = vadd.f32 %v117_v23, %v116_v9  ;;  %v194_v9 = vlaneseq }
  0x4b   :  { %v240_v34 = vmul.f32 0.6931472, %v429_v31  ;;  %v125_v31 = vadd.f32 %v124_v24, %v123_v14 }
  0x4c   :  { %v255_v35 = vsel %vm254_vm3, %v252_v27, %v249_v33  ;;  %v111_v27 = vadd.f32 %v110_v16, %v109_v7  ;;  %v140_v33 = vadd.f32 %v139_v26, %v138_v21  ;;  %v195_v21 = vshrl.u32 %v194_v9, 7 }
  0x4d   :  { %v246_v37 = vsel %vm245_vm4, %v243_v30, %v240_v34  ;;  %v257_v38 = vadd.f32 %v255_v35, %v231_v29  ;;  %v153_v29 = vrot.slane %v152_v18, 1  ;;  %v77_v30 = vrot.slane %v650_v2, 4 }
  0x4e   :  { %v256_v39 = vadd.f32 %v246_v37, %v230_v32  ;;  %v160_v32 = vrot.slane %v159_v25, 1  ;;  %v162_v34 = vmax.f32 %v104_v17, 1e-12  ;;  %v63_v35 = vrot.slane %v643_v61, 4 }
  0x4f   :  { %v333_v40 = vcombine.high %v257_v38, %v257_v38  ;;  %v339_v42 = vsel %vm61_vm0, %v257_v38, 0.0  ;;  %v84_v37 = vrot.slane %v653_v3, 4  ;;  %v147_v38 = vadd.f32 %v146_v19, %v145_v22 }
  0x50   :  { %v332_v1 = vcombine.high %v256_v39, %v256_v39  ;;  %v336_v41 = vsel %vm61_vm0, %v256_v39, 0.0  ;;  %v163_v39 = vmax.f32 %v111_v27, 1e-12  ;;  %430 = vrsqrt.f32 %v162_v34 }
  0x51   :  { %v341_v44 = vsel %vm61_vm0, %v333_v40, 0.0  ;;  %v164_v40 = vmax.f32 %v118_v28, 1e-12  ;;  %v175_v46 = vmax.f32 %v147_v38, 1e-12  ;;  %vm224_vm5 = vcmp.lt.s32.totalorder %v194_v9, 256 }
  0x52   :  { %v337_v0 = vsel %vm61_vm0, %v332_v1, 0.0  ;;  %v154_v1 = vadd.f32 %v153_v29, %v152_v18  ;;  %432 = vrsqrt.f32 %v163_v39  ;;  %v546_v16 = vmov 1966171168  }
  0x53   :  { %v338_v43 = vadd.f32 %v337_v0, %v336_v41  ;;  %v70_v41 = vrot.slane %v647_v63, 4  ;;  %v78_v0 = vadd.f32 %v77_v30, %v650_v2  ;;  %434 = vrsqrt.f32 %v164_v40 }
  0x54   :  { %v176_v47 = vmax.f32 %v154_v1, 1e-12  ;;  %v192_v22 = vunpack.c.l.s4 %v546_v16 }
  0x55   :  { %v340_v45 = vadd.f32 %v339_v42, %v338_v43  ;;  %v161_v42 = vadd.f32 %v160_v32, %v159_v25  ;;  %v165_v43 = vmax.f32 %v125_v31, 1e-12  ;;  %v71_v48 = vadd.f32 %v70_v41, %v647_v63 }
  0x56   :  { %v79_v49 = vrot.slane %v78_v0, 2  ;;  %v193_v17 = vunpack.c.0.s8 %v192_v22 }
  0x57   :  { %v342_v36 = vadd.f32 %v341_v44, %v340_v45  ;;  %v174_v44 = vmax.f32 %v140_v33, 1e-12  ;;  %v64_v45 = vadd.f32 %v63_v35, %v643_v61  ;;  %436 = vrsqrt.f32 %v165_v43 }
  0x58   :  { %v177_v50 = vmax.f32 %v161_v42, 1e-12  ;;  %v72_v52 = vrot.slane %v71_v48, 2  ;;  %v80_v53 = vadd.f32 %v79_v49, %v78_v0  ;;  %v196_v19 = vsub.s32 %v193_v17, %v195_v21 }
  0x59   :  { %343 = vadd.xlane.f32.xlu1 %v342_v36  ;;  %v85_v36 = vadd.f32 %v84_v37, %v653_v3  ;;  %438 = vrsqrt.f32 %v174_v44  ;;  %v65_v51 = vrot.slane %v64_v45, 2 }
  0x5a   :  { %440 = vrsqrt.f32 %v175_v46  ;;  %v431_v3 = vpop.eup %430  ;;  %v73_v55 = vadd.f32 %v72_v52, %v71_v48  ;;  %v81_v56 = vrot.slane %v80_v53, 1 }
  0x5b   :  { %v86_v2 = vrot.slane %v85_v36, 2  ;;  %442 = vrsqrt.f32 %v176_v47  ;;  %v66_v61 = vadd.f32 %v65_v51, %v64_v45 }
  0x5c   :  { %444 = vrsqrt.f32 %v177_v50  ;;  %v433_v57 = vpop.eup %432  ;;  %v82_v62 = vadd.f32 %v81_v56, %v80_v53  ;;  %v74_v4 = vrot.slane %v73_v55, 1 }
  0x5d   :  { %v87_v54 = vadd.f32 %v86_v2, %v85_v36  ;;  %v435_v58 = vpop.eup %434  ;;  %v67_v59 = vrot.slane %v66_v61, 1 }
  0x5e   :  { %v75_v11 = vadd.f32 %v74_v4, %v73_v55  ;;  %v172_v15 = vmul.f32 %v435_v58, %v82_v62 }
  0x5f   :  { %v88_v63 = vrot.slane %v87_v54, 1  ;;  %v68_v6 = vadd.f32 %v67_v59, %v66_v61 }
  0x60   :  { %v171_v14 = vmul.f32 %v433_v57, %v75_v11 }
  0x61   :  { %v437_v60 = vpop.eup %436  ;;  %v89_v7 = vadd.f32 %v88_v63, %v87_v54  ;;  %v170_v13 = vmul.f32 %v431_v3, %v68_v6 }
  0x63   :  { %v439_v10 = vpop.eup %438  ;;  %v173_v20 = vmul.f32 %v437_v60, %v89_v7 }
  0x64   :  { %v441_v12 = vpop.eup %440  ;;  %v182_v23 = vmul.f32 %v439_v10, %v170_v13 }
  0x65   :  { %v443_v5 = vpop.eup %442  ;;  %v183_v18 = vmul.f32 %v441_v12, %v171_v14 }
  0x66   :  { %v445_v8 = vpop.eup %444  ;;  %v184_v24 = vmul.f32 %v443_v5, %v172_v15 }
  0x67   :  { %v185_v25 = vmul.f32 %v445_v8, %v173_v20  ;;  %v190_v26 = vcombine.low %v182_v23, %v183_v18 }
  0x69   :  { %v205_v27 = vcombine.low %v184_v24, %v185_v25  ;;  %v197_v28 = vrot.slane %v190_v26, %v196_v19 }
  0x6b   :  { %v212_v29 = vrot.slane %v205_v27, %v196_v19  ;;  %v204_v30 = vrot.slane %v197_v28, %v196_v19 }
  0x6d   :  { %v219_v31 = vrot.slane %v212_v29, %v196_v19  ;;  %226 = vst.msk [vmem:[#allocation8] sm:$0x3] %vm224_vm5, %v204_v30 }
  0x6f   :  { %227 = vst.msk [vmem:[#allocation8 + $0x2] sm:$0x3] %vm224_vm5, %v219_v31 }
  0x70   :  { %501 = shalt.err (!%p498_p6)
}
  0x71   :  { %s502_s14 = scalar_lea.hbm %s715_s3, 64 }
  0x72   :  { %p503_p7 = scmp.ne.s32.totalorder %s715_s3, %s502_s14  ;;  %p506_p8 = scmp.lt.u32.totalorder %s502_s14, %s715_s3 }
  0x74   :  { %p508_p9 = pnand %p506_p8, %p503_p7 }
  0x76   :  { %511 = shalt.err (!%p508_p9)
}
  0x77   :  { %s548_s19 = smov 32   ;;  %s549_s20 = smov 2   ;;  %v353_v55 = vand.u32 127, %v194_v9  ;;  %vm369_vm10 = vcmask 24576  }
  0x78   :  { %392 = dma.vmem_to_hbm [thread:$0]  %s387_s10, 64, %s715_s3, [#allocation9], %s548_s19, %s548_s19, %s549_s20  }
  0x79   :  { %vm354_vm6 = vcmp.eq.s32.totalorder %v353_v55, 0  ;;  %vm357_vm7 = vcmp.eq.s32.totalorder %v353_v55, 1  ;;  %vm361_vm8 = vcmp.eq.s32.totalorder %v353_v55, 2  ;;  %vm365_vm9 = vcmp.eq.s32.totalorder %v353_v55, 3  ;;  %s550_s26 = smov [#allocation7]  }
  0x7a   :  { %s377_s27 = sshll.u32 %s550_s26, 4  ;;  %s378_s27 = int_to_ptr.vmem [resolvable:$true] %s377_s27 }
  0x7b   :  { %s512_s28 = scalar_lea.vmem %s378_s27, 16  ;;  %s516_s29 = scalar_lea.vmem %s378_s27, 32 }
  0x7c   :  { %p513_p10 = scmp.ne.s32.totalorder %s378_s27, %s512_s28  ;;  %p517_p11 = scmp.lt.s32.totalorder %s378_s27, %s378_s27 }
  0x7d   :  { %p518_p12 = scmp.lt.s32.totalorder %s516_s29, %s512_s28 }
  0x7f   :  { %p519_p13 = por %p518_p12, %p517_p11 }
  0x81   :  { %p520_p0 = pnand %p519_p13, %p513_p10 }
  0xc7   :  { %v278_v32 = vpop.xlane.xlu0 %277 }
  0xc8   :  { %v279_v33 = vrot.slane %v278_v32, 4 }
  0xca   :  { %v280_v34 = vadd.f32 %v279_v33, %v278_v32  ;;  %v322_v37 = vpop.xlane.xlu1 %321 }
  0xcb   :  { %v300_v35 = vpop.xlane.xlu0 %299  ;;  %v323_v1 = vrot.slane %v322_v37, 4 }
  0xcc   :  { %v281_v38 = vrot.slane %v280_v34, 2  ;;  %v301_v39 = vrot.slane %v300_v35, 4 }
  0xcd   :  { %v324_v41 = vadd.f32 %v323_v1, %v322_v37 }
  0xce   :  { %v302_v40 = vadd.f32 %v301_v39, %v300_v35  ;;  %v282_v0 = vadd.f32 %v281_v38, %v280_v34 }
  0xcf   :  { %v325_v43 = vrot.slane %v324_v41, 2 }
  0xd0   :  { %v303_v42 = vrot.slane %v302_v40, 2  ;;  %v283_v44 = vrot.slane %v282_v0, 1 }
  0xd1   :  { %v326_v46 = vadd.f32 %v325_v43, %v324_v41 }
  0xd2   :  { %v304_v45 = vadd.f32 %v303_v42, %v302_v40  ;;  %v284_v36 = vadd.f32 %v283_v44, %v282_v0 }
  0xd3   :  { %v327_v48 = vrot.slane %v326_v46, 1 }
  0xd4   :  { %405 = vpush %v284_v36  ;;  %v305_v47 = vrot.slane %v304_v45, 1 }
  0xd5   :  { %v328_v50 = vadd.f32 %v327_v48, %v326_v46 }
  0xd6   :  { %v306_v49 = vadd.f32 %v305_v47, %v304_v45 }
  0xd8   :  { %407 = vpush %v306_v49 }
  0xd9   :  { %409 = vpush %v328_v50 }
  0xe6   :  { %v344_v51 = vpop.xlane.xlu1 %343 }
  0xe7   :  { %v345_v2 = vrot.slane %v344_v51, 4 }
  0xe9   :  { %v346_v52 = vadd.f32 %v345_v2, %v344_v51 }
  0xeb   :  { %v347_v53 = vrot.slane %v346_v52, 2 }
  0xed   :  { %v348_v61 = vadd.f32 %v347_v53, %v346_v52 }
  0xef   :  { %v349_v54 = vrot.slane %v348_v61, 1 }
  0xf1   :  { %v350_v3 = vadd.f32 %v349_v54, %v348_v61 }
  0xf3   :  { %411 = vpush %v350_v3 }
 0x105   :  { %s406_s3 = spop %405 }
 0x106   :  { %v355_v56 = vstv %s406_s3 }
 0x107   :  { %v356_v58 = vsel %vm354_vm6, %v355_v56, 0.0 }
 0x109   :  { %s408_s23 = spop %407 }
 0x10a   :  { %v358_v57 = vstv %s408_s23  ;;  %s410_s24 = spop %409 }
 0x10b   :  { %v359_v59 = vsel %vm357_vm7, %v358_v57, 0.0  ;;  %v362_v63 = vstv %s410_s24 }
 0x10c   :  { %v360_v60 = vadd.f32 %v359_v59, %v356_v58  ;;  %v363_v10 = vsel %vm361_vm8, %v362_v63, 0.0 }
 0x10e   :  { %v364_v62 = vadd.f32 %v363_v10, %v360_v60 }
 0x124   :  { %s412_s25 = spop %411 }
 0x125   :  { %v366_v4 = vstv %s412_s25 }
 0x126   :  { %v367_v12 = vsel %vm365_vm9, %v366_v4, 0.0 }
 0x127   :  { %v368_v5 = vadd.f32 %v367_v12, %v364_v62 }
 0x129   :  { %370 = vst.msk [vmem:[#allocation7] sm:$0x1] %vm369_vm10, %v368_v5 }
 0x12a   :  { %523 = shalt.err (!%p520_p0)
}
 0x12b   :  { %s524_s5 = scalar_lea.hbm %s714_s2, 16 }
 0x12c   :  { %p525_p1 = scmp.ne.s32.totalorder %s714_s2, %s524_s5  ;;  %p528_p2 = scmp.lt.u32.totalorder %s524_s5, %s714_s2 }
 0x12e   :  { %p530_p3 = pnand %p528_p2, %p525_p1 }
 0x130   :  { %533 = shalt.err (!%p530_p3)
}
 0x131   :  { %380 = dma.vmem_to_hbm [thread:$0]  %s378_s27, 16, %s714_s2, [#allocation4]  }
 0x132   :  { %538 = dma.done.wait [#allocation4], 16  }
 0x133   :  { %539 = vsyncadd [#allocation4], 4294967280 }
 0x134   :  { %540 = dma.done.wait [#allocation9], 64  }
 0x135   :  { %541 = vsyncadd [#allocation9], 4294967232 }
 0x136   :  { %399 = vsyncpa [#allocation3], 1 }
 0x137   :  { %400 = vsyncpa [#allocation6], 1 }
 0x138   :  { %401 = vsyncpa [#allocation4], 1 }
 0x139   :  { %402 = vsyncpa [#allocation9], 1 }

</bundles_post_ra>
